<compile_context>
chip_gen: v7x
topology: tpu7x:2x2x1
jax: 0.10.0
libtpu: 0.0.40
codegen_flags: <defaults>
</compile_context>

<pallas_src>
import functools

import jax
import jax.numpy as jnp
from jax.experimental import pallas as pl
from jax.experimental.pallas import tpu as pltpu


def _round_up(x, m):
    return (x + m - 1) // m * m


def _global_mean_kernel(x_ref, o_ref, acc_ref, *, inv_dhw):
    # x_ref:   (ROW_BLOCK, DHW_TILE) input tile (any float dtype)
    # o_ref:   (ROW_BLOCK, 1)        output (mean per (n, c) row)
    # acc_ref: (ROW_BLOCK, 128)      f32 running lane-partial sums (scratch)
    k = pl.program_id(1)

    @pl.when(k == 0)
    def _():
        acc_ref[...] = jnp.zeros_like(acc_ref)

    x = x_ref[...].astype(jnp.float32)
    rb, dt = x.shape
    # VPU-first reduction: fold the lane-tiled columns (dt // 128 vreg columns)
    # into a 128-lane partial; defer the single cross-lane (XLU) reduce to the
    # finalize step so it runs once per output row, not once per DHW tile.
    acc_ref[...] += x.reshape(rb, dt // 128, 128).sum(axis=1)

    @pl.when(k == pl.num_programs(1) - 1)
    def _():
        total = jnp.sum(acc_ref[...], axis=-1, keepdims=True)  # (rb, 1)
        o_ref[...] = (total * inv_dhw).astype(o_ref.dtype)


def adaptive_avg_pool3d_111(x, *, vmem_budget_bytes=12 * 1024 * 1024):
    """x: (N, C, D, H, W) -> (N, C, 1, 1, 1), exact mean over D*H*W."""
    N, C, D, H, W = x.shape
    NC = N * C
    DHW = D * H * W
    dtype_bytes = jnp.dtype(x.dtype).itemsize

    # --- tile selection -------------------------------------------------------
    # DHW tile: lane-aligned (multiple of 128), capped so VMEM stays bounded even
    # for large volumes.  Row block: as many (n, c) rows as fit the double-buffered
    # input under the budget, multiple of 8, capped at 512.
    dhw_tile = min(_round_up(DHW, 128), 8192)
    max_rows = max(8, vmem_budget_bytes // (2 * dhw_tile * dtype_bytes))
    row_block = max(8, min(512, (max_rows // 8) * 8, _round_up(NC, 8)))

    nc_pad = _round_up(NC, row_block)
    dhw_pad = _round_up(DHW, dhw_tile)

    # Flatten + zero-pad (glue, not compute).  Zero padding keeps row sums exact;
    # the mean is computed with the true 1/DHW at the finalize step.
    x2d = x.reshape(NC, DHW)
    if nc_pad != NC or dhw_pad != DHW:
        x2d = jnp.pad(x2d, ((0, nc_pad - NC), (0, dhw_pad - DHW)))

    grid = (nc_pad // row_block, dhw_pad // dhw_tile)

    kernel = functools.partial(_global_mean_kernel, inv_dhw=1.0 / float(DHW))

    out2d = pl.pallas_call(
        kernel,
        out_shape=jax.ShapeDtypeStruct((nc_pad, 1), x.dtype),
        grid_spec=pltpu.PrefetchScalarGridSpec(
            num_scalar_prefetch=0,
            grid=grid,
            in_specs=[pl.BlockSpec((row_block, dhw_tile), lambda i, k: (i, k))],
            out_specs=pl.BlockSpec((row_block, 1), lambda i, k: (i, 0)),
            scratch_shapes=[pltpu.VMEM((row_block, 128), jnp.float32)],
        ),
        compiler_params=pltpu.CompilerParams(
            dimension_semantics=("parallel", "arbitrary"),
        ),
    )(x2d)

    return out2d[:NC].reshape(N, C, 1, 1, 1)


if __name__ == "__main__":
    key = jax.random.PRNGKey(0)
    # Small NCDHW input consistent with a 3D adaptive pool: (N=2, C=4, D=4, H=8, W=8)
    x = jax.random.normal(key, (2, 4, 4, 8, 8), dtype=jnp.float32)

    out = adaptive_avg_pool3d_111(x)
    out = jax.block_until_ready(out)

    # Sanity check against plain-JAX reference (mean over D, H, W).
    ref = jnp.mean(x, axis=(2, 3, 4), keepdims=True)
    assert out.shape == (2, 4, 1, 1, 1), out.shape
    assert jnp.allclose(out, ref, atol=1e-6, rtol=1e-6)

    # Also exercise a shape with NC not divisible by 8 and DHW not lane-aligned
    # (hits the padding paths) to guard against the old grid=1 fallback.
    x2 = jax.random.normal(key, (3, 3, 5, 7, 9), dtype=jnp.float32)
    out2 = jax.block_until_ready(adaptive_avg_pool3d_111(x2))
    ref2 = jnp.mean(x2, axis=(2, 3, 4), keepdims=True)
    assert out2.shape == (3, 3, 1, 1, 1), out2.shape
    assert jnp.allclose(out2, ref2, atol=1e-5, rtol=1e-5)

    print("KERNEL_OK")
</pallas_src>

<mosaic_0001>
module attributes {stable_mosaic.version = 11 : i64} {
  func.func @_global_mean_kernel(%arg0: i32, %arg1: i32, %arg2: memref<8x256xf32, #tpu.memory_space<vmem>>, %arg3: memref<8x1xf32, #tpu.memory_space<vmem>>, %arg4: memref<8x128xf32, #tpu.memory_space<vmem>>) attributes {dimension_semantics = [#tpu.dimension_semantics<parallel>, #tpu.dimension_semantics<arbitrary>], iteration_bounds = array<i64: 1, 1>, scalar_prefetch = 0 : i64, scratch_operands = 1 : i64, tpu.core_type = #tpu.core_type<tc>, window_params = [{transform_indices = @transform_0, window_bounds = array<i64: 8, 256>}, {transform_indices = @transform_1, window_bounds = array<i64: 8, 1>}]} {
    %c0_i32 = arith.constant 0 : i32
    %0 = arith.cmpi eq, %arg1, %c0_i32 : i32
    %1 = arith.extui %0 : i1 to i32
    %c0_i32_0 = arith.constant 0 : i32
    %2 = arith.cmpi ne, %1, %c0_i32_0 : i32
    scf.if %2 {
      %cst_8 = arith.constant 0.000000e+00 : f32
      %12 = vector.broadcast %cst_8 : f32 to vector<8x128xf32>
      %c0_9 = arith.constant 0 : index
      %c0_10 = arith.constant 0 : index
      %13 = vector.load %arg4[%c0_9, %c0_10] : memref<8x128xf32, #tpu.memory_space<vmem>>, vector<8x128xf32>
      tpu.vector_store %arg4[%c0_9, %c0_10], %12 {strides = array<i32>} : memref<8x128xf32, #tpu.memory_space<vmem>>, vector<8x128xf32>,
    } else {
    }
    %c0 = arith.constant 0 : index
    %c0_1 = arith.constant 0 : index
    %3 = vector.load %arg2[%c0, %c0_1] : memref<8x256xf32, #tpu.memory_space<vmem>>, vector<8x256xf32>
    %c0_2 = arith.constant 0 : index
    %c0_3 = arith.constant 0 : index
    %4 = vector.load %arg4[%c0_2, %c0_3] : memref<8x128xf32, #tpu.memory_space<vmem>>, vector<8x128xf32>
    %5 = vector.shape_cast %3 : vector<8x256xf32> to vector<8x2x128xf32>
    %cst = arith.constant dense<0.000000e+00> : vector<8x128xf32>
    %6 = vector.multi_reduction <add>, %5, %cst [1] : vector<8x2x128xf32> to vector<8x128xf32>
    %7 = arith.addf %4, %6 : vector<8x128xf32>
    %c0_4 = arith.constant 0 : index
    %c0_5 = arith.constant 0 : index
    %8 = vector.load %arg4[%c0_4, %c0_5] : memref<8x128xf32, #tpu.memory_space<vmem>>, vector<8x128xf32>
    tpu.vector_store %arg4[%c0_4, %c0_5], %7 {strides = array<i32>} : memref<8x128xf32, #tpu.memory_space<vmem>>, vector<8x128xf32>,
    %c0_i32_6 = arith.constant 0 : i32
    %9 = arith.cmpi eq, %arg1, %c0_i32_6 : i32
    %10 = arith.extui %9 : i1 to i32
    %c0_i32_7 = arith.constant 0 : i32
    %11 = arith.cmpi ne, %10, %c0_i32_7 : i32
    scf.if %11 {
      %c0_8 = arith.constant 0 : index
      %c0_9 = arith.constant 0 : index
      %12 = vector.load %arg4[%c0_8, %c0_9] : memref<8x128xf32, #tpu.memory_space<vmem>>, vector<8x128xf32>
      %cst_10 = arith.constant dense<0.000000e+00> : vector<8xf32>
      %13 = vector.multi_reduction <add>, %12, %cst_10 [1] : vector<8x128xf32> to vector<8xf32>
      %14 = vector.shape_cast %13 : vector<8xf32> to vector<8x1xf32>
      %cst_11 = arith.constant 3.906250e-03 : f32
      %15 = vector.broadcast %cst_11 : f32 to vector<8x1xf32>
      %16 = arith.mulf %14, %15 : vector<8x1xf32>
      %c0_12 = arith.constant 0 : index
      %c0_13 = arith.constant 0 : index
      %17 = vector.load %arg3[%c0_12, %c0_13] : memref<8x1xf32, #tpu.memory_space<vmem>>, vector<8x1xf32>
      tpu.vector_store %arg3[%c0_12, %c0_13], %16 {strides = array<i32>} : memref<8x1xf32, #tpu.memory_space<vmem>>, vector<8x1xf32>,
    } else {
    }
    return
  }
  func.func @transform_0(%arg0: i32, %arg1: i32) -> (i32, i32) {
    %c0_i32 = arith.constant 0 : i32
    return %arg0, %arg1 : i32, i32
  }
  func.func @transform_1(%arg0: i32, %arg1: i32) -> (i32, i32) {
    %c0_i32 = arith.constant 0 : i32
    %c0_i32_0 = arith.constant 0 : i32
    return %arg0, %c0_i32 : i32, i32
  }
}

</mosaic_0001>

<bundles_post_ra>
// kernel: tpu_custom_call.1
= control target key start
LH: loop header
LB: loop body
LE: loop exit
PB: predicated region body
PF: predicated region fallthrough
CT: control target
= control target key end

     0   :  { %6 = vsyncpa [#allocation4], 0  ;;  %s218_s6 = smov [#allocation3]   ;;  %s256_s0 = inlined_call_operand.hbm [shape: f32[8,256], index: 0, kind: input, shape index: {}]   ;;  %s257_s1 = inlined_call_operand.vmem [shape: f32[8,1], index: 1, kind: output, shape index: {}]  }
   0x1   :  { %s13_s7 = sshll.u32 %s218_s6, 4  ;;  %s194_s10 = scalar_lea.hbm %s256_s0, 256  ;;  %s14_s7 = int_to_ptr.vmem [resolvable:$true] %s13_s7 }
   0x2   :  { %p195_p0 = scmp.ne.s32.totalorder %s256_s0, %s194_s10  ;;  %p198_p1 = scmp.lt.u32.totalorder %s194_s10, %s256_s0 }
   0x4   :  { %p200_p2 = pnand %p198_p1, %p195_p0 }
   0x6   :  { %203 = shalt.err (!%p200_p2)
}
   0x7   :  { %s204_s15 = scalar_lea.vmem %s14_s7, 256  ;;  %p209_p4 = scmp.lt.s32.totalorder %s14_s7, %s14_s7 }
   0x8   :  { %p205_p3 = scmp.ne.s32.totalorder %s14_s7, %s204_s15  ;;  %p210_p5 = scmp.lt.s32.totalorder %s204_s15, %s204_s15 }
   0xa   :  { %p211_p6 = por %p210_p5, %p209_p4 }
   0xc   :  { %p212_p7 = pnand %p211_p6, %p205_p3 }
   0xe   :  { %215 = shalt.err (!%p212_p7)
}
   0xf   :  { %16 = dma.hbm_to_vmem [thread:$0]  %s256_s0, 256, %s14_s7, [#allocation4]  }
  0x10   :  { %216 = dma.done.wait [#allocation4], 256  }
  0x11   :  { %217 = vsyncadd [#allocation4], 4294967040  ;;  %v32_v0 = vlaneseq  ;;  %v219_v1 = vmov 1983009808   ;;  %v220_v4 = vmov 1934713408  }
  0x12   :  { %v30_v2 = vunpack.c.l.s4 %v219_v1  ;;  %v61_v5 = vunpack.c.l.s4 %v220_v4  ;;  %v25_v9 = vld [vmem:[#allocation3] sm:$0xff]  ;;  %v26_v10 = vld [vmem:[#allocation3 + $0x8] sm:$0xff]  ;;  %v221_v12 = vmov 0.0   ;;  %vm94_vm0 = vcmask 1041408  }
  0x13   :  { %v33_v3 = vshrl.u32 %v32_v0, 7  ;;  %v28_v13 = vcombine.high %v25_v9, %v221_v12  ;;  %v43_v15 = vcombine.high %v26_v10, %v221_v12  ;;  %vm159_vm1 = vcmask 1041409  }
  0x14   :  { %v31_v6 = vunpack.c.0.s8 %v30_v2  ;;  %v62_v7 = vunpack.c.0.s8 %v61_v5  ;;  %vm161_vm2 = vcmask 1042434   ;;  %vm163_vm3 = vcmask 1043459  }
  0x15   :  { %vm165_vm4 = vcmask 1044484   ;;  %vm167_vm5 = vcmask 1045509   ;;  %vm169_vm6 = vcmask 1046534   ;;  %vm171_vm7 = vcmask 1047559  }
  0x16   :  { %v34_v8 = vsub.s32 %v31_v6, %v33_v3  ;;  %v65_v11 = vsub.s32 %v62_v7, %v33_v3  ;;  %vm183_vm8 = vcmask 7168  }
  0x18   :  { %v35_v14 = vrot.slane %v25_v9, %v34_v8  ;;  %v50_v16 = vrot.slane %v26_v10, %v34_v8  ;;  %v42_v19 = vrot.slane %v28_v13, %v34_v8  ;;  %v57_v20 = vrot.slane %v43_v15, %v34_v8 }
  0x1a   :  { %v58_v17 = vcombine.low %v35_v14, %v50_v16  ;;  %v59_v18 = vcombine.high %v35_v14, %v50_v16  ;;  %v74_v23 = vcombine.low %v42_v19, %v57_v20  ;;  %v75_v24 = vcombine.high %v42_v19, %v57_v20 }
  0x1c   :  { %v66_v21 = vrot.slane %v58_v17, %v65_v11  ;;  %v73_v22 = vrot.slane %v59_v18, %v65_v11  ;;  %v82_v27 = vrot.slane %v74_v23, %v65_v11  ;;  %v89_v28 = vrot.slane %v75_v24, %v65_v11 }
  0x1e   :  { %v90_v25 = vcombine.high %v66_v21, %v221_v12  ;;  %v95_v26 = vsel %vm94_vm0, %v66_v21, 0.0  ;;  %v91_v30 = vcombine.high %v73_v22, %v221_v12  ;;  %v109_v31 = vsel %vm94_vm0, %v73_v22, 0.0 }
  0x1f   :  { %v96_v29 = vrot.slane %v95_v26, 4  ;;  %v92_v32 = vcombine.high %v82_v27, %v221_v12  ;;  %v93_v33 = vcombine.high %v89_v28, %v221_v12  ;;  %v110_v35 = vrot.slane %v109_v31, 4 }
  0x20   :  { %v102_v34 = vsel %vm94_vm0, %v90_v25, 0.0  ;;  %v116_v38 = vsel %vm94_vm0, %v91_v30, 0.0  ;;  %v123_v39 = vsel %vm94_vm0, %v82_v27, 0.0  ;;  %v137_v47 = vsel %vm94_vm0, %v89_v28, 0.0 }
  0x21   :  { %v97_v36 = vadd.f32 %v96_v29, %v95_v26  ;;  %v103_v37 = vrot.slane %v102_v34, 4  ;;  %v111_v40 = vadd.f32 %v110_v35, %v109_v31  ;;  %v117_v41 = vrot.slane %v116_v38, 4 }
  0x22   :  { %v124_v42 = vrot.slane %v123_v39, 4  ;;  %v130_v43 = vsel %vm94_vm0, %v92_v32, 0.0  ;;  %v138_v51 = vrot.slane %v137_v47, 4  ;;  %v144_v55 = vsel %vm94_vm0, %v93_v33, 0.0 }
  0x23   :  { %v98_v44 = vrot.slane %v97_v36, 2  ;;  %v104_v45 = vadd.f32 %v103_v37, %v102_v34  ;;  %v131_v46 = vrot.slane %v130_v43, 4  ;;  %v112_v48 = vrot.slane %v111_v40, 2 }
  0x24   :  { %v118_v49 = vadd.f32 %v117_v41, %v116_v38  ;;  %v125_v50 = vadd.f32 %v124_v42, %v123_v39  ;;  %v139_v59 = vadd.f32 %v138_v51, %v137_v47  ;;  %v145_v63 = vrot.slane %v144_v55, 4 }
  0x25   :  { %v99_v52 = vadd.f32 %v98_v44, %v97_v36  ;;  %v105_v53 = vrot.slane %v104_v45, 2  ;;  %v132_v54 = vadd.f32 %v131_v46, %v130_v43  ;;  %v113_v56 = vadd.f32 %v112_v48, %v111_v40 }
  0x26   :  { %v119_v57 = vrot.slane %v118_v49, 2  ;;  %v126_v58 = vrot.slane %v125_v50, 2  ;;  %v140_v3 = vrot.slane %v139_v59, 2  ;;  %v146_v7 = vadd.f32 %v145_v63, %v144_v55 }
  0x27   :  { %v100_v60 = vrot.slane %v99_v52, 1  ;;  %v106_v61 = vadd.f32 %v105_v53, %v104_v45  ;;  %v133_v62 = vrot.slane %v132_v54, 2  ;;  %v114_v0 = vrot.slane %v113_v56, 1 }
  0x28   :  { %v120_v1 = vadd.f32 %v119_v57, %v118_v49  ;;  %v127_v2 = vadd.f32 %v126_v58, %v125_v50  ;;  %v141_v11 = vadd.f32 %v140_v3, %v139_v59  ;;  %v147_v14 = vrot.slane %v146_v7, 2 }
  0x29   :  { %v101_v4 = vadd.f32 %v100_v60, %v99_v52  ;;  %v107_v5 = vrot.slane %v106_v61, 1  ;;  %v134_v6 = vadd.f32 %v133_v62, %v132_v54  ;;  %v115_v8 = vadd.f32 %v114_v0, %v113_v56 }
  0x2a   :  { %v121_v9 = vrot.slane %v120_v1, 1  ;;  %v128_v10 = vrot.slane %v127_v2, 1  ;;  %v142_v17 = vrot.slane %v141_v11, 1  ;;  %v148_v19 = vadd.f32 %v147_v14, %v146_v7 }
  0x2b   :  { %v108_v12 = vadd.f32 %v107_v5, %v106_v61  ;;  %v135_v13 = vrot.slane %v134_v6, 1 }
  0x2c   :  { %v122_v15 = vadd.f32 %v121_v9, %v120_v1  ;;  %v129_v16 = vadd.f32 %v128_v10, %v127_v2  ;;  %v143_v21 = vadd.f32 %v142_v17, %v141_v11  ;;  %v149_v23 = vrot.slane %v148_v19, 1 }
  0x2d   :  { %v136_v18 = vadd.f32 %v135_v13, %v134_v6  ;;  %v160_v20 = vsel %vm159_vm1, %v108_v12, %v101_v4 }
  0x2e   :  { %v162_v22 = vsel %vm161_vm2, %v115_v8, %v160_v20  ;;  %v150_v26 = vadd.f32 %v149_v23, %v148_v19 }
  0x2f   :  { %v164_v24 = vsel %vm163_vm3, %v122_v15, %v162_v22 }
  0x30   :  { %v166_v25 = vsel %vm165_vm4, %v129_v16, %v164_v24 }
  0x31   :  { %v168_v27 = vsel %vm167_vm5, %v136_v18, %v166_v25 }
  0x32   :  { %v170_v28 = vsel %vm169_vm6, %v143_v21, %v168_v27 }
  0x33   :  { %v172_v29 = vsel %vm171_vm7, %v150_v26, %v170_v28 }
  0x34   :  { %180 = vadd.xlane.f32.xlu0 %v172_v29 }
  0xc1   :  { %v181_v30 = vpop.xlane.xlu0 %180 }
  0xc2   :  { %v182_v31 = vmul.f32 0.00390625, %v181_v30 }
  0xc4   :  { %184 = vst.msk [vmem:[%s257_s1] sm:$0xff] %vm183_vm8, %v182_v31 }
  0xc5   :  { %189 = vsyncpa [#allocation4], 1 }

</bundles_post_ra>
